<compile_context>
chip_gen: v5e
topology: v5e:2x2
jax: 0.10.0
libtpu: 0.0.40
codegen_flags: <defaults>
</compile_context>

<pallas_src>
import functools

import numpy as np
import jax
import jax.numpy as jnp
from jax.experimental import pallas as pl
from jax.experimental.pallas import tpu as pltpu


# ----------------------------------------------------------------------------
# Host-side construction of the blur operators (matches cv2.blur semantics).
# ----------------------------------------------------------------------------
def _reflect_101(idx, n):
    """OpenCV BORDER_REFLECT_101 index map (… 2 1 | 0 1 2 … n-1 | n-2 n-3 …)."""
    if n == 1:
        return 0
    period = 2 * (n - 1)
    idx = abs(idx) % period
    return period - idx if idx >= n else idx


def _box_count_matrix(n, w):
    """Unnormalized 1D box operator: M[i, j] = number of taps of the size-w box
    (anchor w // 2, BORDER_REFLECT_101) at output i hitting input j.
    Entries are small integers — exactly representable in bf16."""
    a = w // 2  # cv2 default anchor (-1, -1) -> ksize >> 1
    m = np.zeros((n, n), dtype=np.float64)
    for i in range(n):
        for off in range(-a, w - a):
            m[i, _reflect_101(i + off, n)] += 1.0
    return m


# ----------------------------------------------------------------------------
# Generation-aware VMEM sizing and block-size selection.
# ----------------------------------------------------------------------------
def _vmem_limit_bytes():
    """Scoped-VMEM limit: ~3/4 of physical VMEM, capped at 96 MiB.
    v7x (64 MiB physical) -> 48 MiB; v5e / v6e (128 MiB) -> 96 MiB."""
    cap = 64 * 1024 * 1024  # conservative (v7x) fallback
    try:
        info_cap = getattr(pltpu.get_tpu_info(), "vmem_capacity_bytes", None)
        if info_cap:
            cap = int(info_cap)
    except Exception:
        pass
    return int(min(cap * 3 // 4, 96 * 1024 * 1024))


def _pick_block_rows(n_planes, row_in_bytes, bytes_for, budget_bytes, *,
                     sublane_multiple, min_split_rows,
                     target_block_bytes=2 * 1024 * 1024):
    """Pick TB (planes per grid step).

    Legal TB: n_planes itself, or a divisor of n_planes that is a multiple of
    `sublane_multiple` (second-minor block-dim constraint).  Policy (per perf
    review): take the largest block that fits the VMEM budget; only split the
    grid when every step still carries >= min_split_rows rows and at least
    ~target_block_bytes of input, so small problems run as a single grid step.
    """
    cands = {n_planes}
    for d in range(sublane_multiple, n_planes, sublane_multiple):
        if n_planes % d == 0:
            cands.add(d)
    cands = sorted(cands)

    feasible = [tb for tb in cands if bytes_for(tb) <= budget_bytes]
    if not feasible:
        # Respect the budget — never silently exceed the scoped VMEM limit.
        raise ValueError(
            "Smooth kernel: no legal block size fits the VMEM budget "
            f"(n_planes={n_planes}, budget={budget_bytes} bytes).")

    big_enough = [tb for tb in feasible
                  if tb >= min_split_rows
                  and tb * row_in_bytes >= target_block_bytes]
    # Blocks at/above the target already run near the HBM roofline with a full
    # MXU M dimension; splitting beyond that only adds per-step overhead.
    # Below the target, take the largest feasible block (grid of 1 when the
    # whole batch fits).
    return min(big_enough) if big_enough else max(feasible)


# ----------------------------------------------------------------------------
# Pallas kernels.
# ----------------------------------------------------------------------------
def _dense_blur_kernel(x_ref, m_ref, o_ref, *, inv_scale):
    # x_ref: (TB, hw) input planes; m_ref: (hw, hw) integer box counts in the
    # compute dtype; o_ref: (TB, hw).
    x = x_ref[...].astype(m_ref.dtype)          # VPU cast; MXU runs at bf16 rate
    acc = jnp.dot(x, m_ref[...], preferred_element_type=jnp.float32)
    o_ref[...] = (acc * inv_scale).astype(o_ref.dtype)   # exact counts / w^2 in f32


def _separable_blur_kernel(x_ref, bh_ref, bw_ref, o_ref, *, inv_scale):
    # x_ref: (TB, H, W); bh_ref: (H, H) counts; bw_ref: (W, W) counts.
    cdt = bh_ref.dtype
    tb = x_ref.shape[0]
    x = x_ref[...].astype(cdt)
    # Width-direction blur: t[b, h, v] = sum_w x[b, h, w] * BW[v, w].
    bw_b = jnp.broadcast_to(bw_ref[...], (tb,) + bw_ref.shape)
    t = jnp.einsum("bhw,bvw->bhv", x, bw_b,
                   preferred_element_type=jnp.float32).astype(cdt)
    # Height-direction blur: y[b, u, v] = sum_h BH[u, h] * t[b, h, v].
    bh_b = jnp.broadcast_to(bh_ref[...], (tb,) + bh_ref.shape)
    y = jnp.einsum("buh,bhv->buv", bh_b, t, preferred_element_type=jnp.float32)
    o_ref[...] = (y * inv_scale).astype(o_ref.dtype)


# ----------------------------------------------------------------------------
# Wrapper: JAX/Pallas equivalent of Smooth(w).forward(noise_and_cover).
# ----------------------------------------------------------------------------
def smooth(noise_and_cover, w, *, compute_dtype=jnp.bfloat16,
           out_dtype=jnp.float32, dense_operator_limit_bytes=2 * 1024 * 1024):
    x = noise_and_cover[0]                       # (B, C, H, W)
    B, C, H, W = x.shape
    n_planes, hw = B * C, H * W

    cdt = jnp.dtype(compute_dtype)
    odt = jnp.dtype(out_dtype)
    in_bytes = jnp.dtype(x.dtype).itemsize
    out_bytes = odt.itemsize
    inv_scale = 1.0 / float(w * w)               # folded into the f32 epilogue

    bh = _box_count_matrix(H, w)                 # exact integer counts
    bw = _box_count_matrix(W, w)

    vmem_limit = _vmem_limit_bytes()
    budget = vmem_limit - 4 * 1024 * 1024        # headroom for compiler scratch

    dense_bytes = hw * hw * cdt.itemsize
    use_dense = dense_bytes <= dense_operator_limit_bytes

    if use_dense:
        # One lane-dense MXU matmul per block:  (TB, hw) @ (hw, hw).
        m = jnp.asarray(np.kron(bh, bw).T, dtype=cdt)        # (hw, hw) counts
        xf = x.reshape(n_planes, hw)                          # lane-dense rows

        def bytes_for(tb):
            # Double-buffered in/out blocks + double-buffered constant operator
            # (constant index_map -> fetched once, but 2 buffers allocated) +
            # the in-kernel compute-dtype cast of the block.
            return (2 * tb * hw * in_bytes + 2 * tb * hw * out_bytes
                    + 2 * dense_bytes + tb * hw * cdt.itemsize)

        tb = _pick_block_rows(n_planes, hw * in_bytes, bytes_for, budget,
                              sublane_multiple=8, min_split_rows=256)
        grid = (n_planes // tb,)
        kernel = functools.partial(_dense_blur_kernel, inv_scale=inv_scale)
        operands = (xf, m)
        in_specs = [
            pl.BlockSpec((tb, hw), lambda i: (i, 0)),
            pl.BlockSpec((hw, hw), lambda i: (0, 0)),   # constant -> one DMA
        ]
        out_shape = jax.ShapeDtypeStruct((n_planes, hw), odt)
        out_specs = pl.BlockSpec((tb, hw), lambda i: (i, 0))
        flops = 2 * n_planes * hw * hw
        op_hbm_bytes = dense_bytes
    else:
        # Separable path: two small batched MXU contractions per block.
        bh_m = jnp.asarray(bh, dtype=cdt)
        bw_m = jnp.asarray(bw, dtype=cdt)
        xf = x.reshape(n_planes, H, W)
        op_hbm_bytes = (H * H + W * W) * cdt.itemsize

        def bytes_for(tb):
            inter = tb * hw * (2 * cdt.itemsize + 2 * 4)      # casts + f32 temps
            bcast = tb * (H * H + W * W) * cdt.itemsize       # broadcast operators
            return (2 * tb * hw * in_bytes + 2 * tb * hw * out_bytes
                    + 2 * op_hbm_bytes + inter + bcast)

        tb = _pick_block_rows(n_planes, hw * in_bytes, bytes_for, budget,
                              sublane_multiple=1, min_split_rows=1)
        grid = (n_planes // tb,)
        kernel = functools.partial(_separable_blur_kernel, inv_scale=inv_scale)
        operands = (xf, bh_m, bw_m)
        in_specs = [
            pl.BlockSpec((tb, H, W), lambda i: (i, 0, 0)),
            pl.BlockSpec((H, H), lambda i: (0, 0)),
            pl.BlockSpec((W, W), lambda i: (0, 0)),
        ]
        out_shape = jax.ShapeDtypeStruct((n_planes, H, W), odt)
        out_specs = pl.BlockSpec((tb, H, W), lambda i: (i, 0, 0))
        flops = 2 * n_planes * hw * (H + W)

    cost = pl.CostEstimate(
        flops=int(flops),
        transcendentals=0,
        bytes_accessed=int(n_planes * hw * (in_bytes + out_bytes) + op_hbm_bytes),
    )

    out = pl.pallas_call(
        kernel,
        out_shape=out_shape,
        grid_spec=pltpu.PrefetchScalarGridSpec(
            num_scalar_prefetch=0,
            grid=grid,
            in_specs=in_specs,
            out_specs=out_specs,
        ),
        compiler_params=pltpu.CompilerParams(
            dimension_semantics=("parallel",),
            vmem_limit_bytes=vmem_limit,
        ),
        cost_estimate=cost,
    )(*operands)

    result = list(noise_and_cover)
    result[0] = out.reshape(B, C, H, W)
    return result


# ----------------------------------------------------------------------------
# Demo / self-test.
# ----------------------------------------------------------------------------
if __name__ == "__main__":
    def _numpy_box_blur(x_np, w):
        _, _, H, W = x_np.shape
        bh = _box_count_matrix(H, w) / float(w)
        bw = _box_count_matrix(W, w) / float(w)
        return np.einsum("ih,bchw,jw->bcij", bh, x_np.astype(np.float64), bw)

    key = jax.random.PRNGKey(0)
    k1, k2, k3 = jax.random.split(key, 3)

    # Primary config: (B, C, H, W) = (2, 4, 16, 16), w = 3 -> dense Kronecker
    # path, 8 planes handled by a SINGLE grid step (TB = n_planes, grid=(1,)).
    B, C, H, W = 2, 4, 16, 16
    w_r = 3
    encode_image = jax.random.uniform(k1, (B, C, H, W), jnp.float32)
    cover_image = jax.random.uniform(k2, (B, C, H, W), jnp.float32)

    out_list = smooth([encode_image, cover_image], w=w_r)
    noised = jax.block_until_ready(out_list[0])

    assert noised.shape == (B, C, H, W)
    assert noised.dtype == jnp.float32
    np.testing.assert_allclose(np.asarray(noised, dtype=np.float64),
                               _numpy_box_blur(np.asarray(encode_image), w_r),
                               atol=3e-2, rtol=0.0)
    assert out_list[1] is cover_image   # untouched passthrough

    # Second config: non-square planes, even window, plane count not a
    # multiple of 8 (block == full batch) — still the dense path, grid=(1,).
    B2, C2, H2, W2 = 2, 3, 16, 32
    w2 = 4
    x2 = jax.random.uniform(k3, (B2, C2, H2, W2), jnp.float32)
    out2 = jax.block_until_ready(smooth([x2], w=w2)[0])
    assert out2.shape == (B2, C2, H2, W2) and out2.dtype == jnp.float32
    np.testing.assert_allclose(np.asarray(out2, dtype=np.float64),
                               _numpy_box_blur(np.asarray(x2), w2),
                               atol=3e-2, rtol=0.0)

    print("KERNEL_OK")
</pallas_src>

<mosaic_0001>
module attributes {stable_mosaic.version = 11 : i64} {
  func.func @_dense_blur_kernel(%arg0: i32, %arg1: memref<8x256xf32, #tpu.memory_space<vmem>>, %arg2: memref<256x256xbf16, #tpu.memory_space<vmem>>, %arg3: memref<8x256xf32, #tpu.memory_space<vmem>>) attributes {dimension_semantics = [#tpu.dimension_semantics<parallel>], iteration_bounds = array<i64: 1>, scalar_prefetch = 0 : i64, scratch_operands = 0 : i64, tpu.core_type = #tpu.core_type<tc>, window_params = [{transform_indices = @transform_0, window_bounds = array<i64: 8, 256>}, {pipeline_mode = #tpu.pipeline_mode<synchronous>, transform_indices = @transform_1, window_bounds = array<i64: 256, 256>}, {transform_indices = @transform_2, window_bounds = array<i64: 8, 256>}]} {
    %c0 = arith.constant 0 : index
    %c0_0 = arith.constant 0 : index
    %0 = vector.load %arg1[%c0, %c0_0] : memref<8x256xf32, #tpu.memory_space<vmem>>, vector<8x256xf32>
    %1 = arith.truncf %0 : vector<8x256xf32> to vector<8x256xbf16>
    %c0_1 = arith.constant 0 : index
    %c0_2 = arith.constant 0 : index
    %2 = vector.load %arg2[%c0_1, %c0_2] : memref<256x256xbf16, #tpu.memory_space<vmem>>, vector<256x256xbf16>
    %cst = arith.constant dense<0.000000e+00> : vector<8x256xf32>
    %3 = tpu.matmul %1, %2, %cst {dimension_numbers = #tpu.dot_dimension_numbers<[1], [0], [0], [1], [0, 0, 1, 1], [], []>} : vector<8x256xbf16>, vector<256x256xbf16>, vector<8x256xf32> -> vector<8x256xf32>
    %cst_3 = arith.constant 0.111111112 : f32
    %4 = vector.broadcast %cst_3 : f32 to vector<8x256xf32>
    %5 = arith.mulf %3, %4 : vector<8x256xf32>
    %c0_4 = arith.constant 0 : index
    %c0_5 = arith.constant 0 : index
    %6 = vector.load %arg3[%c0_4, %c0_5] : memref<8x256xf32, #tpu.memory_space<vmem>>, vector<8x256xf32>
    tpu.vector_store %arg3[%c0_4, %c0_5], %5 {strides = array<i32>} : memref<8x256xf32, #tpu.memory_space<vmem>>, vector<8x256xf32>,
    return
  }
  func.func @transform_0(%arg0: i32) -> (i32, i32) {
    %c0_i32 = arith.constant 0 : i32
    %c0_i32_0 = arith.constant 0 : i32
    return %arg0, %c0_i32 : i32, i32
  }
  func.func @transform_1(%arg0: i32) -> (i32, i32) {
    %c0_i32 = arith.constant 0 : i32
    %c0_i32_0 = arith.constant 0 : i32
    %c0_i32_1 = arith.constant 0 : i32
    return %c0_i32, %c0_i32_0 : i32, i32
  }
  func.func @transform_2(%arg0: i32) -> (i32, i32) {
    %c0_i32 = arith.constant 0 : i32
    %c0_i32_0 = arith.constant 0 : i32
    return %arg0, %c0_i32 : i32, i32
  }
}

</mosaic_0001>

<bundles_post_ra>
// kernel: tpu_custom_call.1
= control target key start
LH: loop header
LB: loop body
LE: loop exit
PB: predicated region body
PF: predicated region fallthrough
CT: control target
= control target key end

     0   :  { %7 = vsyncpa [#allocation3], 0  ;;  %s584_s0 = inlined_call_operand.hbm [shape: f32[8,256], index: 0, kind: input, shape index: {}]   ;;  %s585_s1 = inlined_call_operand.hbm [shape: bf16[256,256], index: 1, kind: input, shape index: {}]   ;;  %s586_s2 = inlined_call_operand.hbm [shape: f32[8,256], index: 2, kind: output, shape index: {}]  }
   0x1   :  { %8 = vsyncpa [#allocation6], 0 }
   0x2   :  { %9 = vsyncpa [#allocation4], 0  ;;  %s15_s11 = sshll.u32 %s584_s0, 4  ;;  %s555_s12 = smov [#allocation2]   ;;  %s16_s11 = int_to_ptr.hbm [resolvable:$true] %s15_s11 }
   0x3   :  { %s17_s13 = sshll.u32 %s555_s12, 4  ;;  %s25_s16 = sshll.u32 %s585_s1, 4  ;;  %s18_s13 = int_to_ptr.vmem [resolvable:$true] %s17_s13  ;;  %s26_s16 = int_to_ptr.hbm [resolvable:$true] %s25_s16 }
   0x4   :  { %20 = dma.hbm_to_vmem [thread:$0]  %s16_s11, 256, %s18_s13, [#allocation3]  }
   0x5   :  { %s556_s17 = smov [#allocation5]   ;;  %s557_s19 = smov 128  }
   0x6   :  { %s27_s18 = sshll.u32 %s556_s17, 4  ;;  %s558_s20 = smov 8   ;;  %s28_s18 = int_to_ptr.vmem [resolvable:$true] %s27_s18 }
   0x7   :  { %33 = dma.hbm_to_vmem [thread:$0]  %s26_s16, 4096, %s28_s18, [#allocation6], %s557_s19, %s557_s19, %s558_s20  }
   0x8   :  { %549 = dma.done.wait [#allocation3], 256  }
   0x9   :  { %550 = vsyncadd [#allocation3], 4294967040 }
   0xa   :  { %551 = dma.done.wait [#allocation6], 4096  }
   0xb   :  { %552 = vsyncadd [#allocation6], 4294963200  ;;  %v370_v0 = vld [vmem:[#allocation5 + $0x70] sm:$0xf]  ;;  %v455_v1 = vld [vmem:[#allocation5 + $0x74] sm:$0xf0] }
   0xc   :  { %v434_v2 = vld [vmem:[#allocation5 + $0xf0] sm:$0xf]  ;;  %v371_v3 = vor.u32 %v455_v1, %v370_v0  ;;  %v471_v4 = vld [vmem:[#allocation5 + $0xf4] sm:$0xf0]  ;;  %v454_v5 = vld [vmem:[#allocation5 + $0x74] sm:$0xf] }
   0xd   :  { %v372_v6 = vld [vmem:[#allocation5 + $0x78] sm:$0xf0]  ;;  %v435_v7 = vor.u32 %v471_v4, %v434_v2  ;;  %v470_v9 = vld [vmem:[#allocation5 + $0xf4] sm:$0xf]  ;;  %v362_v11 = vld [vmem:[#allocation5 + $0x60] sm:$0xf] }
   0xe   :  { %v375_v8 = vor.u32 %v454_v5, %v372_v6  ;;  %v436_v10 = vld [vmem:[#allocation5 + $0xf8] sm:$0xf0]  ;;  %238 = vmatpush.bf16.msra.mxu0 %v371_v3  ;;  %v453_v13 = vld [vmem:[#allocation5 + $0x64] sm:$0xf0]  ;;  %v426_v14 = vld [vmem:[#allocation5 + $0xe0] sm:$0xf] }
   0xf   :  { %v439_v12 = vor.u32 %v470_v9, %v436_v10  ;;  %v469_v15 = vld [vmem:[#allocation5 + $0xe4] sm:$0xf0]  ;;  %251 = vmatpush.bf16.msra.mxu1 %v435_v7  ;;  %v363_v16 = vor.u32 %v453_v13, %v362_v11  ;;  %v452_v18 = vld [vmem:[#allocation5 + $0x64] sm:$0xf]  ;;  %v364_v19 = vld [vmem:[#allocation5 + $0x68] sm:$0xf0] }
  0x10   :  { %264 = vmatpush.bf16.msra.mxu2 %v375_v8  ;;  %v427_v17 = vor.u32 %v469_v15, %v426_v14  ;;  %v468_v20 = vld [vmem:[#allocation5 + $0xe4] sm:$0xf]  ;;  %v367_v21 = vor.u32 %v452_v18, %v364_v19  ;;  %v428_v22 = vld [vmem:[#allocation5 + $0xe8] sm:$0xf0]  ;;  %v354_v23 = vld [vmem:[#allocation5 + $0x50] sm:$0xf] }
  0x11   :  { %277 = vmatpush.bf16.msra.mxu3 %v439_v12  ;;  %v451_v24 = vld [vmem:[#allocation5 + $0x54] sm:$0xf0]  ;;  %v431_v25 = vor.u32 %v468_v20, %v428_v22  ;;  %v418_v26 = vld [vmem:[#allocation5 + $0xd0] sm:$0xf]  ;;  %v450_v28 = vld [vmem:[#allocation5 + $0x54] sm:$0xf] }
  0x12   :  { %v467_v27 = vld [vmem:[#allocation5 + $0xd4] sm:$0xf0]  ;;  %239 = vmatpush.bf16.msra.mxu0 %v363_v16  ;;  %v355_v29 = vor.u32 %v451_v24, %v354_v23  ;;  %v356_v30 = vld [vmem:[#allocation5 + $0x58] sm:$0xf0]  ;;  %v466_v31 = vld [vmem:[#allocation5 + $0xd4] sm:$0xf] }
  0x13   :  { %v420_v32 = vld [vmem:[#allocation5 + $0xd8] sm:$0xf0]  ;;  %252 = vmatpush.bf16.msra.mxu1 %v427_v17  ;;  %v419_v33 = vor.u32 %v467_v27, %v418_v26  ;;  %v359_v34 = vor.u32 %v450_v28, %v356_v30  ;;  %v346_v35 = vld [vmem:[#allocation5 + $0x40] sm:$0xf]  ;;  %v449_v36 = vld [vmem:[#allocation5 + $0x44] sm:$0xf0] }
  0x14   :  { %265 = vmatpush.bf16.msra.mxu2 %v367_v21  ;;  %v410_v37 = vld [vmem:[#allocation5 + $0xc0] sm:$0xf]  ;;  %v423_v38 = vor.u32 %v466_v31, %v420_v32  ;;  %v465_v39 = vld [vmem:[#allocation5 + $0xc4] sm:$0xf0]  ;;  %v448_v40 = vld [vmem:[#allocation5 + $0x44] sm:$0xf]  ;;  %v347_v44 = vor.u32 %v449_v36, %v346_v35 }
  0x15   :  { %278 = vmatpush.bf16.msra.mxu3 %v431_v25  ;;  %v348_v41 = vld [vmem:[#allocation5 + $0x48] sm:$0xf0]  ;;  %v464_v42 = vld [vmem:[#allocation5 + $0xc4] sm:$0xf]  ;;  %v411_v45 = vor.u32 %v465_v39, %v410_v37  ;;  %v338_v47 = vld [vmem:[#allocation5 + $0x30] sm:$0xf] }
  0x16   :  { %v412_v43 = vld [vmem:[#allocation5 + $0xc8] sm:$0xf0]  ;;  %240 = vmatpush.bf16.msra.mxu0 %v355_v29  ;;  %v351_v46 = vor.u32 %v448_v40, %v348_v41  ;;  %v447_v48 = vld [vmem:[#allocation5 + $0x34] sm:$0xf0]  ;;  %v402_v49 = vld [vmem:[#allocation5 + $0xb0] sm:$0xf] }
  0x17   :  { %253 = vmatpush.bf16.msra.mxu1 %v419_v33  ;;  %v415_v50 = vor.u32 %v464_v42, %v412_v43  ;;  %v463_v51 = vld [vmem:[#allocation5 + $0xb4] sm:$0xf0]  ;;  %v446_v52 = vld [vmem:[#allocation5 + $0x34] sm:$0xf]  ;;  %v340_v53 = vld [vmem:[#allocation5 + $0x38] sm:$0xf0]  ;;  %v339_v56 = vor.u32 %v447_v48, %v338_v47 }
  0x18   :  { %266 = vmatpush.bf16.msra.mxu2 %v359_v34  ;;  %v462_v54 = vld [vmem:[#allocation5 + $0xb4] sm:$0xf]  ;;  %v404_v55 = vld [vmem:[#allocation5 + $0xb8] sm:$0xf0]  ;;  %v403_v57 = vor.u32 %v463_v51, %v402_v49  ;;  %v343_v58 = vor.u32 %v446_v52, %v340_v53  ;;  %v330_v59 = vld [vmem:[#allocation5 + $0x20] sm:$0xf] }
  0x19   :  { %279 = vmatpush.bf16.msra.mxu3 %v423_v38  ;;  %v445_v60 = vld [vmem:[#allocation5 + $0x24] sm:$0xf0]  ;;  %v394_v61 = vld [vmem:[#allocation5 + $0xa0] sm:$0xf]  ;;  %v407_v62 = vor.u32 %v462_v54, %v404_v55  ;;  %v444_v0 = vld [vmem:[#allocation5 + $0x24] sm:$0xf] }
  0x1a   :  { %241 = vmatpush.bf16.msra.mxu0 %v347_v44  ;;  %v461_v63 = vld [vmem:[#allocation5 + $0xa4] sm:$0xf0]  ;;  %v332_v1 = vld [vmem:[#allocation5 + $0x28] sm:$0xf0]  ;;  %v460_v2 = vld [vmem:[#allocation5 + $0xa4] sm:$0xf]  ;;  %v331_v4 = vor.u32 %v445_v60, %v330_v59 }
  0x1b   :  { %254 = vmatpush.bf16.msra.mxu1 %v411_v45  ;;  %v396_v3 = vld [vmem:[#allocation5 + $0xa8] sm:$0xf0]  ;;  %v395_v5 = vor.u32 %v461_v63, %v394_v61  ;;  %v335_v6 = vor.u32 %v444_v0, %v332_v1  ;;  %v322_v7 = vld [vmem:[#allocation5 + $0x10] sm:$0xf]  ;;  %v443_v8 = vld [vmem:[#allocation5 + $0x14] sm:$0xf0] }
  0x1c   :  { %267 = vmatpush.bf16.msra.mxu2 %v351_v46  ;;  %v386_v9 = vld [vmem:[#allocation5 + $0x90] sm:$0xf]  ;;  %v399_v10 = vor.u32 %v460_v2, %v396_v3  ;;  %v459_v11 = vld [vmem:[#allocation5 + $0x94] sm:$0xf0]  ;;  %v442_v12 = vld [vmem:[#allocation5 + $0x14] sm:$0xf]  ;;  %v323_v16 = vor.u32 %v443_v8, %v322_v7 }
  0x1d   :  { %280 = vmatpush.bf16.msra.mxu3 %v415_v50  ;;  %v324_v13 = vld [vmem:[#allocation5 + $0x18] sm:$0xf0]  ;;  %v458_v14 = vld [vmem:[#allocation5 + $0x94] sm:$0xf]  ;;  %v387_v17 = vor.u32 %v459_v11, %v386_v9  ;;  %v314_v19 = vld [vmem:[#allocation5] sm:$0xf] }
  0x1e   :  { %242 = vmatpush.bf16.msra.mxu0 %v339_v56  ;;  %v388_v15 = vld [vmem:[#allocation5 + $0x98] sm:$0xf0]  ;;  %v327_v18 = vor.u32 %v442_v12, %v324_v13  ;;  %v441_v20 = vld [vmem:[#allocation5 + $0x4] sm:$0xf0]  ;;  %v378_v21 = vld [vmem:[#allocation5 + $0x80] sm:$0xf] }
  0x1f   :  { %255 = vmatpush.bf16.msra.mxu1 %v403_v57  ;;  %v391_v22 = vor.u32 %v458_v14, %v388_v15  ;;  %v457_v23 = vld [vmem:[#allocation5 + $0x84] sm:$0xf0]  ;;  %v440_v24 = vld [vmem:[#allocation5 + $0x4] sm:$0xf]  ;;  %v316_v25 = vld [vmem:[#allocation5 + $0x8] sm:$0xf0]  ;;  %v315_v28 = vor.u32 %v441_v20, %v314_v19 }
  0x20   :  { %268 = vmatpush.bf16.msra.mxu2 %v343_v58  ;;  %v456_v26 = vld [vmem:[#allocation5 + $0x84] sm:$0xf]  ;;  %v380_v27 = vld [vmem:[#allocation5 + $0x88] sm:$0xf0]  ;;  %v42_v29 = vld [vmem:[#allocation2] sm:$0xff]  ;;  %v379_v30 = vor.u32 %v457_v23, %v378_v21  ;;  %v319_v31 = vor.u32 %v440_v24, %v316_v25  ;;  %s559_s0 = smov [#allocation7]  }
  0x21   :  { %281 = vmatpush.bf16.msra.mxu3 %v407_v62  ;;  %v43_v32 = vld [vmem:[#allocation2 + $0x8] sm:$0xff]  ;;  %v383_v33 = vor.u32 %v456_v26, %v380_v27  ;;  %v44_v34 = vpack.c.bf16 %v42_v29, %v42_v29  ;;  %s299_s1 = sshll.u32 %s559_s0, 4  ;;  %s301_s23 = sshll.u32 %s586_s2, 4  ;;  %s300_s1 = int_to_ptr.vmem [resolvable:$true] %s299_s1  ;;  %s302_s23 = int_to_ptr.hbm [resolvable:$true] %s301_s23 }
  0x22   :  { %243 = vmatpush.bf16.msra.mxu0 %v331_v4  ;;  %v45_v35 = vpack.c.bf16 %v43_v32, %v43_v32 }
  0x23   :  { %256 = vmatpush.bf16.msra.mxu1 %v395_v5 }
  0x24   :  { %269 = vmatpush.bf16.msra.mxu2 %v335_v6 }
  0x25   :  { %282 = vmatpush.bf16.msra.mxu3 %v399_v10 }
  0x26   :  { %244 = vmatpush.bf16.msra.mxu0 %v323_v16 }
  0x27   :  { %257 = vmatpush.bf16.msra.mxu1 %v387_v17 }
  0x28   :  { %270 = vmatpush.bf16.msra.mxu2 %v327_v18 }
  0x29   :  { %283 = vmatpush.bf16.msra.mxu3 %v391_v22 }
  0x2a   :  { %245 = vmatpush.bf16.msra.mxu0 %v315_v28 }
  0x2b   :  { %258 = vmatpush.bf16.msra.mxu1 %v379_v30 }
  0x2c   :  { %271 = vmatpush.bf16.msra.mxu2 %v319_v31 }
  0x2d   :  { %284 = vmatpush.bf16.msra.mxu3 %v383_v33  ;;  %246 = vmatmul.bf16.vlgmr.msra.gmra.mxu0 %v44_v34 }
  0x2e   :  { %259 = vmatmul.bf16.vlgmr.msra.gmra.mxu1 %v45_v35 }
  0x2f   :  { %272 = vmatmul.bf16.vlgmr.msra.gmra.mxu2 %v44_v34 }
  0x30   :  { %285 = vmatmul.bf16.vlgmr.msra.gmra.mxu3 %v45_v35 }
  0xaa   :  { %v247_v36 = vpop.f32.mrf.mxu0 }
  0xab   :  { %v260_v37 = vpop.f32.mrf.mxu1 }
  0xac   :  { %v261_v38 = vadd.f32 %v260_v37, %v247_v36 }
  0xae   :  { %v290_v39 = vmul.f32 0.11111111, %v261_v38 }
  0xb0   :  { %292 = vst [vmem:[#allocation7] sm:$0xff] %v290_v39 }
  0xb2   :  { %v273_v40 = vpop.f32.mrf.mxu2  ;;  %v249_v42 = vpop.f32.mrf.mxu0 }
  0xb3   :  { %v286_v41 = vpop.f32.mrf.mxu3  ;;  %v262_v44 = vpop.f32.mrf.mxu1 }
  0xb4   :  { %v287_v43 = vadd.f32 %v286_v41, %v273_v40 }
  0xb6   :  { %v291_v45 = vmul.f32 0.11111111, %v287_v43 }
  0xb8   :  { %293 = vst [vmem:[#allocation7 + $0x8] sm:$0xff] %v291_v45 }
  0xb9   :  { %304 = dma.vmem_to_hbm [thread:$0]  %s300_s1, 256, %s302_s23, [#allocation4]  }
  0xba   :  { %v275_v46 = vpop.f32.mrf.mxu2 }
  0xbb   :  { %v288_v47 = vpop.f32.mrf.mxu3 }
  0xbc   :  { %553 = dma.done.wait [#allocation4], 256  }
  0xbd   :  { %554 = vsyncadd [#allocation4], 4294967040 }
  0xbe   :  { %309 = vsyncpa [#allocation3], 1 }
  0xbf   :  { %310 = vsyncpa [#allocation6], 1 }
  0xc0   :  { %311 = vsyncpa [#allocation4], 1 }

</bundles_post_ra>
